<compile_context>
chip_gen: v5e
topology: v5e:2x2
jax: 0.10.0
libtpu: 0.0.40
codegen_flags: <defaults>
</compile_context>

<pallas_src>
import math
import numpy as np

import jax
import jax.numpy as jnp
from jax.experimental import pallas as pl
from jax.experimental.pallas import tpu as pltpu


# ---------------------------------------------------------------------------
# helpers used inside kernels
# ---------------------------------------------------------------------------
def _layernorm(x, g, b, eps=1e-5):
    mu = jnp.mean(x, axis=-1, keepdims=True)
    var = jnp.mean(jnp.square(x - mu), axis=-1, keepdims=True)
    return (x - mu) * jax.lax.rsqrt(var + eps) * g + b


def _gelu(x):
    # exact (erf-based) GELU, matching nn.GELU() default
    return 0.5 * x * (1.0 + jax.lax.erf(x * (1.0 / math.sqrt(2.0))))


# ---------------------------------------------------------------------------
# kernel 1: initial LayerNorm over the flattened (B*S, D) slab
# ---------------------------------------------------------------------------
def initial_norm_kernel(x_ref, g_ref, b_ref, o_ref):
    o_ref[...] = _layernorm(x_ref[...], g_ref[...], b_ref[...])


def initial_norm(x2d, g, b):
    # TODO(synk): tile with (8k, 128m) BlockSpecs for production B*S*D sizes.
    return pl.pallas_call(
        initial_norm_kernel,
        out_shape=jax.ShapeDtypeStruct(x2d.shape, jnp.float32),
    )(x2d, g, b)


# ---------------------------------------------------------------------------
# kernel 2: one transformer encoder layer with restricted self-attention.
#           Whole batch per invocation; activations are (N, D) with N = B*S.
# ---------------------------------------------------------------------------
def make_layer_kernel(batch, seq, num_heads, head_dim, window_size):
    D = num_heads * head_dim
    N = batch * seq
    scale = 1.0 / float(head_dim) ** 0.5

    def layer_kernel(x_ref, bid_q_ref, bid_k_ref, keep_k_ref,
                     wqkv_ref, bqkv_ref, wo_ref, bo_ref,
                     g1_ref, b1_ref,
                     w1_ref, bf1_ref, w2_ref, bf2_ref,
                     g2_ref, b2_ref,
                     o_ref):
        x = x_ref[...]                                            # (N, D)

        # ---- fused Q/K/V projection: one wide MXU matmul ------------------
        qkv = jnp.dot(x, wqkv_ref[...],
                      preferred_element_type=jnp.float32) + bqkv_ref[...]   # (N, 3D)

        # ---- attention mask built in-kernel (no (B,S,S) DMA) --------------
        # block-diagonal (no cross-batch), banded (|i-j| <= window), key-pad.
        row = jax.lax.broadcasted_iota(jnp.int32, (N, N), 0)
        col = jax.lax.broadcasted_iota(jnp.int32, (N, N), 1)
        in_window = jnp.abs(row - col) <= window_size             # (N, N)
        same_batch = bid_q_ref[...] == bid_k_ref[...]             # (N,1)==(1,N) -> (N, N)
        keep_key = keep_k_ref[...] > 0.5                          # (1, N)
        allowed = jnp.logical_and(jnp.logical_and(same_batch, in_window), keep_key)

        # ---- all heads at once: (H, N, hd) batched contractions -----------
        q_h = jnp.stack([qkv[:, h * head_dim:(h + 1) * head_dim]
                         for h in range(num_heads)], axis=0)
        k_h = jnp.stack([qkv[:, D + h * head_dim: D + (h + 1) * head_dim]
                         for h in range(num_heads)], axis=0)
        v_h = jnp.stack([qkv[:, 2 * D + h * head_dim: 2 * D + (h + 1) * head_dim]
                         for h in range(num_heads)], axis=0)

        s = jnp.einsum('hqd,hkd->hqk', q_h, k_h,
                       preferred_element_type=jnp.float32) * scale    # (H, N, N)
        # masked_fill semantics: set (not add) -10000 where masked
        s = jnp.where(allowed[None, :, :], s, -10000.0)
        # TODO(synk): the reference's isnan(scores)/isnan(attn)/isnan(output)
        # Python-level fallbacks are identity for finite inputs and are omitted.

        m = jnp.max(s, axis=-1, keepdims=True)
        e = jnp.exp(s - m)
        denom = jnp.sum(e, axis=-1, keepdims=True)
        attn = e * pl.reciprocal(denom, approx=True) + 1e-6       # softmax(...) + 1e-6
        # zero the cross-batch entries (they do not exist in the per-batch
        # reference); within-batch masked entries keep the +1e-6 like PyTorch.
        attn = attn * same_batch[None, :, :].astype(jnp.float32)

        ctx = jnp.einsum('hqk,hkd->hqd', attn, v_h,
                         preferred_element_type=jnp.float32)      # (H, N, hd)

        # ---- output projection, merged per head (block matmul identity) ---
        wo = wo_ref[...]                                          # (D, D)
        wo_h = jnp.stack([wo[h * head_dim:(h + 1) * head_dim, :]
                          for h in range(num_heads)], axis=0)     # (H, hd, D)
        attn_out = jnp.sum(
            jnp.einsum('hqd,hde->hqe', ctx, wo_h,
                       preferred_element_type=jnp.float32), axis=0) + bo_ref[...]

        # ---- residual + norm1, feed-forward, residual + norm2 -------------
        h1 = _layernorm(x + attn_out, g1_ref[...], b1_ref[...])

        f = jnp.dot(h1, w1_ref[...], preferred_element_type=jnp.float32) + bf1_ref[...]
        f = _gelu(f)
        f = jnp.dot(f, w2_ref[...], preferred_element_type=jnp.float32) + bf2_ref[...]

        o_ref[...] = _layernorm(h1 + f, g2_ref[...], b2_ref[...])  # single dense write

    return layer_kernel


def transformer_layer(x2d, bid_q, bid_k, keep_k, lp, *,
                      batch, seq, num_heads, head_dim, window_size):
    N, D = x2d.shape
    kernel = make_layer_kernel(batch, seq, num_heads, head_dim, window_size)
    return pl.pallas_call(
        kernel,
        out_shape=jax.ShapeDtypeStruct((N, D), jnp.float32),
        # Explicit VMEM budget; safe on v5e/v6e (128 MiB) and v7x (64 MiB).
        compiler_params=pltpu.CompilerParams(vmem_limit_bytes=32 * 1024 * 1024),
    )(x2d, bid_q, bid_k, keep_k,
      lp["wqkv"], lp["bqkv"], lp["wo"], lp["bo"],
      lp["g1"], lp["b1"],
      lp["w1"], lp["bf1"], lp["w2"], lp["bf2"],
      lp["g2"], lp["b2"])


# ---------------------------------------------------------------------------
# kernel 3: masked mean pooling (as one matmul) + classifier head
# ---------------------------------------------------------------------------
def head_kernel(x_ref, pool_ref,
                w1_ref, b1_ref, g1_ref, be1_ref,
                w2_ref, b2_ref, g2_ref, be2_ref,
                w3_ref, b3_ref, o_ref):
    # pool is (B, N) with keep/count block-diagonal weights -> masked mean
    pooled = jnp.dot(pool_ref[...], x_ref[...],
                     preferred_element_type=jnp.float32)          # (B, D)
    h = jnp.dot(pooled, w1_ref[...], preferred_element_type=jnp.float32) + b1_ref[...]
    h = _gelu(_layernorm(h, g1_ref[...], be1_ref[...]))
    h = jnp.dot(h, w2_ref[...], preferred_element_type=jnp.float32) + b2_ref[...]
    h = _gelu(_layernorm(h, g2_ref[...], be2_ref[...]))
    o_ref[...] = jnp.dot(h, w3_ref[...], preferred_element_type=jnp.float32) + b3_ref[...]


def classifier_head(x2d, pool, hp):
    B = pool.shape[0]
    nc = hp["w3"].shape[1]
    return pl.pallas_call(
        head_kernel,
        out_shape=jax.ShapeDtypeStruct((B, nc), jnp.float32),
    )(x2d, pool, hp["w1"], hp["b1"], hp["g1"], hp["be1"],
      hp["w2"], hp["b2"], hp["g2"], hp["be2"], hp["w3"], hp["b3"])


# ---------------------------------------------------------------------------
# parameter init (deterministic, synthetic) + full forward
# ---------------------------------------------------------------------------
def init_params(key, vocab, D, F, L, num_classes):
    keys = iter(jax.random.split(key, 64))

    def lin(fan_in, fan_out, gain=0.1):
        w = jax.random.normal(next(keys), (fan_in, fan_out), jnp.float32)
        w = w * (gain / np.sqrt(fan_in))
        b = jnp.zeros((1, fan_out), jnp.float32)
        return w, b

    emb = jax.random.normal(next(keys), (vocab, D), jnp.float32) * 0.1
    emb = jnp.clip(emb, -3.0, 3.0)
    emb = emb.at[0].set(0.0)   # padding_idx = 0

    params = {
        "emb": emb,
        "init_g": jnp.ones((1, D), jnp.float32),
        "init_b": jnp.zeros((1, D), jnp.float32),
        "layers": [],
    }
    for _ in range(L):
        wq, bq = lin(D, D); wk, bk = lin(D, D)
        wv, bv = lin(D, D); wo, bo = lin(D, D)
        w1, bf1 = lin(D, F, gain=0.5)
        w2, bf2 = lin(F, D, gain=0.5)
        params["layers"].append(dict(
            # fused QKV weight/bias: (D, 3D) / (1, 3D)
            wqkv=jnp.concatenate([wq, wk, wv], axis=1),
            bqkv=jnp.concatenate([bq, bk, bv], axis=1),
            wo=wo, bo=bo,
            g1=jnp.ones((1, D), jnp.float32), b1=jnp.zeros((1, D), jnp.float32),
            w1=w1, bf1=bf1, w2=w2, bf2=bf2,
            g2=jnp.ones((1, D), jnp.float32), b2=jnp.zeros((1, D), jnp.float32)))

    hw1, hb1 = lin(D, 256, gain=0.5)
    hw2, hb2 = lin(256, 64, gain=0.5)
    hw3, hb3 = lin(64, num_classes, gain=0.5)
    params["head"] = dict(
        w1=hw1, b1=hb1, g1=jnp.ones((1, 256), jnp.float32), be1=jnp.zeros((1, 256), jnp.float32),
        w2=hw2, b2=hb2, g2=jnp.ones((1, 64), jnp.float32), be2=jnp.zeros((1, 64), jnp.float32),
        w3=hw3, b3=hb3)
    return params


def forward(tokens, params, *, num_heads, head_dim, window_size):
    B, S = tokens.shape
    D = params["emb"].shape[1]
    N = B * S

    # --- glue: embedding lookup + sinusoidal positional encoding -----------
    x = params["emb"][tokens]                                     # (B, S, D)
    pos = jnp.arange(S, dtype=jnp.float32)[:, None]
    div = jnp.exp(jnp.arange(0, D, 2, dtype=jnp.float32) * (-np.log(10000.0) / D))
    pe = jnp.zeros((S, D), jnp.float32)
    pe = pe.at[:, 0::2].set(jnp.sin(pos * div))
    pe = pe.at[:, 1::2].set(jnp.cos(pos * div))
    x = x + pe[None, :, :]
    # embedding_dropout: identity in eval mode

    # --- glue: flatten batch*seq; tiny O(N) mask helper vectors ------------
    x2d = x.reshape(N, D)
    keep = (tokens != 0).astype(jnp.float32)                      # (B, S)
    keep_k = keep.reshape(1, N)                                   # key is non-pad
    bid = jnp.repeat(jnp.arange(B, dtype=jnp.float32), S)         # batch id per row
    bid_q = bid.reshape(N, 1)
    bid_k = bid.reshape(1, N)

    # --- glue: masked-mean pooling matrix (B, N) ----------------------------
    cnt = jnp.sum(keep, axis=1, keepdims=True)                    # (B, 1)
    cnt = jnp.where(cnt == 0.0, 1.0, cnt)
    per_tok = keep / cnt                                          # (B, S)
    eye = jnp.eye(B, dtype=jnp.float32)
    pool = (eye[:, :, None] * per_tok[:, None, :]).reshape(B, N)  # block-diagonal

    # --- Pallas kernels -----------------------------------------------------
    x2d = initial_norm(x2d, params["init_g"], params["init_b"])
    for lp in params["layers"]:
        x2d = transformer_layer(x2d, bid_q, bid_k, keep_k, lp,
                                batch=B, seq=S, num_heads=num_heads,
                                head_dim=head_dim, window_size=window_size)
    return classifier_head(x2d, pool, params["head"])


# ---------------------------------------------------------------------------
if __name__ == "__main__":
    B, S, D = 2, 8, 32          # batch, seq_len (= max_len), embedding_dim
    H = 4                       # n_heads  (D % H == 0, head_dim = 8)
    F = 64                      # dim_feedforward (scaled down)
    L = 2                       # num_encoder_layers (scaled down)
    WINDOW = 2                  # window_size
    NUM_CLASSES = 2
    VOCAB = 50

    key = jax.random.PRNGKey(0)
    k_tok, k_par = jax.random.split(key)

    tokens = jax.random.randint(k_tok, (B, S), 1, VOCAB, dtype=jnp.int32)
    tokens = tokens.at[0, 6:].set(0)   # padding at the end of sequence 0
    tokens = tokens.at[1, 7:].set(0)   # padding at the end of sequence 1

    params = init_params(k_par, VOCAB, D, F, L, NUM_CLASSES)

    logits = forward(tokens, params,
                     num_heads=H, head_dim=D // H, window_size=WINDOW)
    logits = jax.block_until_ready(logits)

    assert logits.shape == (B, NUM_CLASSES)
    assert not bool(jnp.any(jnp.isnan(logits)))
    print("KERNEL_OK")
</pallas_src>

<mosaic_0001>
module attributes {stable_mosaic.version = 11 : i64} {
  func.func @initial_norm_kernel(%arg0: memref<16x32xf32, #tpu.memory_space<vmem>>, %arg1: memref<1x32xf32, #tpu.memory_space<vmem>>, %arg2: memref<1x32xf32, #tpu.memory_space<vmem>>, %arg3: memref<16x32xf32, #tpu.memory_space<vmem>>) attributes {dimension_semantics = [], scalar_prefetch = 0 : i64, scratch_operands = 0 : i64, tpu.core_type = #tpu.core_type<tc>} {
    %c0 = arith.constant 0 : index
    %c0_0 = arith.constant 0 : index
    %0 = vector.load %arg0[%c0, %c0_0] : memref<16x32xf32, #tpu.memory_space<vmem>>, vector<16x32xf32>
    %c0_1 = arith.constant 0 : index
    %c0_2 = arith.constant 0 : index
    %1 = vector.load %arg1[%c0_1, %c0_2] : memref<1x32xf32, #tpu.memory_space<vmem>>, vector<1x32xf32>
    %c0_3 = arith.constant 0 : index
    %c0_4 = arith.constant 0 : index
    %2 = vector.load %arg2[%c0_3, %c0_4] : memref<1x32xf32, #tpu.memory_space<vmem>>, vector<1x32xf32>
    %cst = arith.constant dense<0.000000e+00> : vector<16xf32>
    %3 = vector.multi_reduction <add>, %0, %cst [1] : vector<16x32xf32> to vector<16xf32>
    %4 = vector.shape_cast %3 : vector<16xf32> to vector<16x1xf32>
    %cst_5 = arith.constant 3.200000e+01 : f32
    %5 = vector.broadcast %cst_5 : f32 to vector<16x1xf32>
    %6 = arith.divf %4, %5 : vector<16x1xf32>
    %7 = vector.broadcast %6 : vector<16x1xf32> to vector<16x32xf32>
    %8 = arith.subf %0, %7 : vector<16x32xf32>
    %9 = arith.mulf %8, %8 : vector<16x32xf32>
    %cst_6 = arith.constant dense<0.000000e+00> : vector<16xf32>
    %10 = vector.multi_reduction <add>, %9, %cst_6 [1] : vector<16x32xf32> to vector<16xf32>
    %11 = vector.shape_cast %10 : vector<16xf32> to vector<16x1xf32>
    %cst_7 = arith.constant 3.200000e+01 : f32
    %12 = vector.broadcast %cst_7 : f32 to vector<16x1xf32>
    %13 = arith.divf %11, %12 : vector<16x1xf32>
    %14 = vector.broadcast %6 : vector<16x1xf32> to vector<16x32xf32>
    %15 = arith.subf %0, %14 : vector<16x32xf32>
    %cst_8 = arith.constant 9.99999974E-6 : f32
    %16 = vector.broadcast %cst_8 : f32 to vector<16x1xf32>
    %17 = arith.addf %13, %16 : vector<16x1xf32>
    %18 = math.rsqrt %17 : vector<16x1xf32>
    %19 = vector.broadcast %18 : vector<16x1xf32> to vector<16x32xf32>
    %20 = arith.mulf %15, %19 : vector<16x32xf32>
    %21 = vector.broadcast %1 : vector<1x32xf32> to vector<16x32xf32>
    %22 = arith.mulf %20, %21 : vector<16x32xf32>
    %23 = vector.broadcast %2 : vector<1x32xf32> to vector<16x32xf32>
    %24 = arith.addf %22, %23 : vector<16x32xf32>
    %c0_9 = arith.constant 0 : index
    %c0_10 = arith.constant 0 : index
    %25 = vector.load %arg3[%c0_9, %c0_10] : memref<16x32xf32, #tpu.memory_space<vmem>>, vector<16x32xf32>
    tpu.vector_store %arg3[%c0_9, %c0_10], %24 {strides = array<i32>} : memref<16x32xf32, #tpu.memory_space<vmem>>, vector<16x32xf32>,
    return
  }
}

</mosaic_0001>

<bundles_post_ra>
// kernel: tpu_custom_call.1
= control target key start
LH: loop header
LB: loop body
LE: loop exit
PB: predicated region body
PF: predicated region fallthrough
CT: control target
= control target key end

     0   :  { %8 = vsyncpa [#allocation3], 0  ;;  %s275_s0 = inlined_call_operand.hbm [shape: f32[16,32], index: 0, kind: input, shape index: {}]   ;;  %s276_s1 = inlined_call_operand.hbm [shape: f32[1,32], index: 1, kind: input, shape index: {}]   ;;  %s277_s2 = inlined_call_operand.vmem [shape: f32[1,32], index: 2, kind: input, shape index: {}]   ;;  %s278_s3 = inlined_call_operand.hbm [shape: f32[16,32], index: 3, kind: output, shape index: {}]  }
   0x1   :  { %9 = vsyncpa [#allocation6], 0 }
   0x2   :  { %10 = vsyncpa [#allocation4], 0  ;;  %s15_s14 = sshll.u32 %s275_s0, 4  ;;  %s225_s15 = smov [#allocation2]   ;;  %s16_s14 = int_to_ptr.hbm [resolvable:$true] %s15_s14 }
   0x3   :  { %s17_s16 = sshll.u32 %s225_s15, 4  ;;  %s29_s19 = sshll.u32 %s276_s1, 4  ;;  %s18_s16 = int_to_ptr.vmem [resolvable:$true] %s17_s16  ;;  %s30_s19 = int_to_ptr.hbm [resolvable:$true] %s29_s19 }
   0x4   :  { %s226_s20 = smov 128   ;;  %s227_s21 = smov 8  }
   0x5   :  { %23 = dma.hbm_to_vmem [thread:$0]  %s16_s14, 256, %s18_s16, [#allocation3], %s226_s20, %s226_s20, %s227_s21  }
   0x6   :  { %s228_s22 = smov [#allocation5]  }
   0x7   :  { %s31_s23 = sshll.u32 %s228_s22, 4  ;;  %s32_s23 = int_to_ptr.vmem [resolvable:$true] %s31_s23 }
   0x8   :  { %34 = dma.hbm_to_vmem [thread:$0]  %s30_s19, 16, %s32_s23, [#allocation6]  }
   0x9   :  { %219 = dma.done.wait [#allocation3], 256  }
   0xa   :  { %220 = vsyncadd [#allocation3], 4294967040 }
   0xb   :  { %221 = dma.done.wait [#allocation6], 16  }
   0xc   :  { %222 = vsyncadd [#allocation6], 4294967280  ;;  %vm49_vm0 = vcmask 261120   ;;  %v45_v0 = vld [vmem:[#allocation2] sm:$0xff]  ;;  %v46_v2 = vld [vmem:[#allocation2 + $0x8] sm:$0xff]  ;;  %v229_v4 = vmov 32.0  }
   0xd   :  { %v50_v1 = vsel %vm49_vm0, %v45_v0, 0.0  ;;  %v53_v3 = vsel %vm49_vm0, %v46_v2, 0.0  ;;  %141 = vrcp.f32 %v229_v4  ;;  %v139_v35 = vld [vmem:[#allocation5] ss:$0 sm:$0xff]  ;;  %v140_v39 = vld [vmem:[%s277_s2] ss:$0 sm:$0xff] }
   0xe   :  { %51 = vadd.xlane.f32.xlu0 %v50_v1  ;;  %s230_s24 = smov [#allocation7]   ;;  %s119_s28 = sshll.u32 %s278_s3, 4  ;;  %s120_s28 = int_to_ptr.hbm [resolvable:$true] %s119_s28 }
   0xf   :  { %s117_s25 = sshll.u32 %s230_s24, 4  ;;  %s118_s25 = int_to_ptr.vmem [resolvable:$true] %s117_s25 }
  0x13   :  { %v142_v5 = vpop.eup %141 }
  0x14   :  { %v57_v6 = vmul.f32 32.0, %v142_v5  ;;  %vm61_vm1 = vweird.f32 %v142_v5 }
  0x16   :  { %54 = vadd.xlane.f32.xlu0 %v53_v3  ;;  %v58_v7 = vsub.f32 1.0, %v57_v6 }
  0x18   :  { %v59_v8 = vmul.f32 %v142_v5, %v58_v7 }
  0x1a   :  { %v60_v9 = vadd.f32 %v142_v5, %v59_v8 }
  0x1c   :  { %v62_v10 = vsel %vm61_vm1, %v142_v5, %v60_v9 }
  0x81   :  { %v52_v11 = vpop.xlane.xlu0 %51 }
  0x82   :  { %v63_v12 = vmul.f32 %v62_v10, %v52_v11 }
  0x84   :  { %v65_v13 = vsub.f32 %v45_v0, %v63_v12 }
  0x86   :  { %v67_v14 = vmul.f32 %v65_v13, %v65_v13 }
  0x88   :  { %v69_v15 = vsel %vm49_vm0, %v67_v14, 0.0 }
  0x89   :  { %70 = vadd.xlane.f32.xlu1 %v69_v15  ;;  %v55_v16 = vpop.xlane.xlu0 %54 }
  0x8a   :  { %v64_v17 = vmul.f32 %v62_v10, %v55_v16 }
  0x8c   :  { %v66_v18 = vsub.f32 %v46_v2, %v64_v17 }
  0x8e   :  { %v68_v19 = vmul.f32 %v66_v18, %v66_v18 }
  0x90   :  { %v72_v20 = vsel %vm49_vm0, %v68_v19, 0.0 }
  0x91   :  { %73 = vadd.xlane.f32.xlu1 %v72_v20 }
  0xfc   :  { %v71_v21 = vpop.xlane.xlu1 %70 }
  0xfd   :  { %v75_v22 = vmul.f32 %v71_v21, %v62_v10 }
  0xff   :  { %v77_v23 = vadd.f32 1e-05, %v75_v22 }
 0x101   :  { %143 = vrsqrt.f32 %v77_v23  ;;  %vm85_vm3 = vweird.f32 %v77_v23 }
 0x104   :  { %v74_v24 = vpop.xlane.xlu1 %73 }
 0x105   :  { %v76_v25 = vmul.f32 %v74_v24, %v62_v10 }
 0x107   :  { %v144_v26 = vpop.eup %143  ;;  %v78_v27 = vadd.f32 1e-05, %v76_v25 }
 0x108   :  { %v80_v28 = vmul.f32 %v144_v26, %v77_v23  ;;  %vm86_vm2 = vweird.f32 %v144_v26 }
 0x109   :  { %145 = vrsqrt.f32 %v78_v27  ;;  %vm87_vm4 = vmor %vm85_vm3, %vm86_vm2  ;;  %vm95_vm6 = vweird.f32 %v78_v27 }
 0x10a   :  { %v81_v29 = vmul.f32 %v144_v26, %v80_v28 }
 0x10c   :  { %v82_v30 = vmul.f32 0.5, %v81_v29 }
 0x10e   :  { %v83_v31 = vsub.f32 1.5, %v82_v30 }
 0x10f   :  { %v146_v32 = vpop.eup %145 }
 0x110   :  { %v84_v33 = vmul.f32 %v144_v26, %v83_v31  ;;  %v90_v34 = vmul.f32 %v146_v32, %v78_v27  ;;  %vm96_vm5 = vweird.f32 %v146_v32 }
 0x111   :  { %vm97_vm7 = vmor %vm95_vm6, %vm96_vm5 }
 0x112   :  { %v88_v36 = vsel %vm87_vm4, %v144_v26, %v84_v33  ;;  %v91_v37 = vmul.f32 %v146_v32, %v90_v34 }
 0x113   :  { %v99_v38 = vmul.f32 %v88_v36, %v65_v13 }
 0x114   :  { %v92_v40 = vmul.f32 0.5, %v91_v37 }
 0x115   :  { %v104_v41 = vmul.f32 %v139_v35, %v99_v38 }
 0x116   :  { %v93_v42 = vsub.f32 1.5, %v92_v40 }
 0x117   :  { %v109_v43 = vadd.f32 %v140_v39, %v104_v41 }
 0x118   :  { %v94_v44 = vmul.f32 %v146_v32, %v93_v42 }
 0x119   :  { %111 = vst.msk [vmem:[#allocation7] sm:$0xff] %vm49_vm0, %v109_v43 }
 0x11a   :  { %v98_v45 = vsel %vm97_vm7, %v146_v32, %v94_v44 }
 0x11b   :  { %v100_v46 = vmul.f32 %v98_v45, %v66_v18 }
 0x11d   :  { %v105_v47 = vmul.f32 %v139_v35, %v100_v46 }
 0x11f   :  { %v110_v48 = vadd.f32 %v140_v39, %v105_v47 }
 0x121   :  { %112 = vst.msk [vmem:[#allocation7 + $0x8] sm:$0xff] %vm49_vm0, %v110_v48 }
 0x122   :  { %125 = dma.vmem_to_hbm [thread:$0]  %s118_s25, 256, %s120_s28, [#allocation4], %s226_s20, %s226_s20, %s227_s21  }
 0x123   :  { %223 = dma.done.wait [#allocation4], 256  }
 0x124   :  { %224 = vsyncadd [#allocation4], 4294967040 }
 0x125   :  { %130 = vsyncpa [#allocation3], 1 }
 0x126   :  { %131 = vsyncpa [#allocation6], 1 }
 0x127   :  { %132 = vsyncpa [#allocation4], 1 }

</bundles_post_ra>
